<compile_context>
chip_gen: v7x
topology: tpu7x:2x2x1
jax: 0.10.0
libtpu: 0.0.40
codegen_flags: <defaults>
</compile_context>

<pallas_src>
import numpy as np
import jax
import jax.numpy as jnp
from jax.experimental import pallas as pl
from jax.experimental.pallas import tpu as pltpu


_INV_SQRT2 = 0.7071067811865476


def _erf_approx(x):
    """erf via Abramowitz & Stegun 7.1.26 (|err| <= 1.5e-7); VPU/EUP ops only."""
    a1 = 0.254829592
    a2 = -0.284496736
    a3 = 1.421413741
    a4 = -1.453152027
    a5 = 1.061405429
    p = 0.3275911
    sign = jnp.where(x >= 0.0, 1.0, -1.0)
    ax = jnp.abs(x)
    t = 1.0 / (1.0 + p * ax)
    poly = ((((a5 * t + a4) * t + a3) * t + a2) * t + a1) * t
    y = 1.0 - poly * jnp.exp(-ax * ax)
    return sign * y


def _gelu_exact(x):
    """Exact (erf-based) GELU, matching PyTorch nn.GELU() default."""
    return 0.5 * x * (1.0 + _erf_approx(x * _INV_SQRT2))


def _mlp_kernel(x_ref, w1_ref, b1_ref, w2_ref, b2_ref, o_ref):
    # x_ref : (tm, D)   streamed row tile
    # w1_ref: (D, H)    VMEM-resident across all grid steps
    # b1_ref: (1, H)    resident
    # w2_ref: (H, D)    resident
    # b2_ref: (1, D)    resident
    # First matmul on the MXU in native dtype, f32 accumulation.
    h = jnp.dot(x_ref[...], w1_ref[...], preferred_element_type=jnp.float32)
    h = h + b1_ref[...].astype(jnp.float32)
    h = _gelu_exact(h)
    # Second matmul: h is f32; w2 stays in its native dtype.
    y = jnp.dot(h.astype(w2_ref.dtype), w2_ref[...],
                preferred_element_type=jnp.float32)
    y = y + b2_ref[...].astype(jnp.float32)
    # TODO(synk): nn.Dropout() is identity in eval mode; train-mode dropout
    # (pltpu.prng_seed + pltpu.prng_random_bits masking) intentionally omitted.
    o_ref[...] = y.astype(o_ref.dtype)


def _choose_block_m(D, H, x_itemsize):
    """Biggest row tile whose streamed/intermediate buffers fit a VMEM budget."""
    # Per-row bytes: x tile + out tile (each double-buffered by the pipeline)
    # plus the f32 intermediates (h and y) the compiler keeps in VMEM/vregs.
    bytes_per_row = 2 * (D * x_itemsize) * 2 + H * 4 + D * 4
    budget = 12 * 1024 * 1024  # leave headroom for weights + double-buffering
    for tm in (2048, 1024, 512, 256, 128, 64, 32, 16, 8):
        if tm * bytes_per_row <= budget:
            return tm
    return 8


def mlp_forward(x, w1, b1, w2, b2, *, block_m: int | None = None):
    """
    x : [..., n_embd]
    w1: [n_embd, 2*n_embd]   (= ln1.weight.T)   b1: [2*n_embd]
    w2: [2*n_embd, n_embd]   (= ln2.weight.T)   b2: [n_embd]
    returns ln2(gelu(ln1(x)))  (dropout = identity / eval mode)
    """
    orig_shape = x.shape
    D = orig_shape[-1]
    H = w1.shape[1]

    x2 = x.reshape(-1, D)
    M = x2.shape[0]

    if block_m is None:
        block_m = _choose_block_m(D, H, x2.dtype.itemsize)

    if M <= block_m:
        tm = M                      # single grid step; full-extent block is legal
        m_pad = M
    else:
        tm = block_m
        m_pad = ((M + tm - 1) // tm) * tm
        if m_pad != M:
            x2 = jnp.pad(x2, ((0, m_pad - M), (0, 0)))

    grid = (m_pad // tm,)

    b1_2d = b1.reshape(1, H)
    b2_2d = b2.reshape(1, D)

    out = pl.pallas_call(
        _mlp_kernel,
        out_shape=jax.ShapeDtypeStruct((m_pad, D), x.dtype),
        grid_spec=pltpu.PrefetchScalarGridSpec(
            num_scalar_prefetch=0,
            grid=grid,
            in_specs=[
                pl.BlockSpec((tm, D), lambda i: (i, 0)),   # x row tile (streamed)
                pl.BlockSpec((D, H), lambda i: (0, 0)),    # W1 (resident)
                pl.BlockSpec((1, H), lambda i: (0, 0)),    # b1 (resident)
                pl.BlockSpec((H, D), lambda i: (0, 0)),    # W2 (resident)
                pl.BlockSpec((1, D), lambda i: (0, 0)),    # b2 (resident)
            ],
            out_specs=pl.BlockSpec((tm, D), lambda i: (i, 0)),
        ),
        compiler_params=pltpu.CompilerParams(
            dimension_semantics=("parallel",),
        ),
    )(x2, w1, b1_2d, w2, b2_2d)

    if m_pad != M:
        out = out[:M]
    return out.reshape(orig_shape)


if __name__ == "__main__":
    # Small shapes consistent with the module: batch=2, seq=8, n_embd=32.
    B, S, E = 2, 8, 32
    H = 2 * E

    key = jax.random.PRNGKey(0)
    kx, kw1, kb1, kw2, kb2 = jax.random.split(key, 5)

    x = jax.random.normal(kx, (B, S, E), dtype=jnp.float32)
    # PyTorch nn.Linear init scale ~ 1/sqrt(fan_in); exact distribution irrelevant.
    w1 = jax.random.uniform(kw1, (E, H), jnp.float32, -1.0, 1.0) / np.sqrt(E)
    b1 = jax.random.uniform(kb1, (H,), jnp.float32, -1.0, 1.0) / np.sqrt(E)
    w2 = jax.random.uniform(kw2, (H, E), jnp.float32, -1.0, 1.0) / np.sqrt(H)
    b2 = jax.random.uniform(kb2, (E,), jnp.float32, -1.0, 1.0) / np.sqrt(H)

    out = mlp_forward(x, w1, b1, w2, b2)
    out = jax.block_until_ready(out)

    # Reference (plain JAX reproduction of the PyTorch forward, eval mode).
    h_ref = jax.nn.gelu(x @ w1 + b1, approximate=False)
    ref = h_ref @ w2 + b2
    np.testing.assert_allclose(np.asarray(out), np.asarray(ref),
                               rtol=1e-4, atol=1e-4)

    print("KERNEL_OK")
</pallas_src>

<mosaic_0001>
module attributes {stable_mosaic.version = 11 : i64} {
  func.func @_mlp_kernel(%arg0: i32, %arg1: memref<16x32xf32, #tpu.memory_space<vmem>>, %arg2: memref<32x64xf32, #tpu.memory_space<vmem>>, %arg3: memref<1x64xf32, #tpu.memory_space<vmem>>, %arg4: memref<64x32xf32, #tpu.memory_space<vmem>>, %arg5: memref<1x32xf32, #tpu.memory_space<vmem>>, %arg6: memref<16x32xf32, #tpu.memory_space<vmem>>) attributes {dimension_semantics = [#tpu.dimension_semantics<parallel>], iteration_bounds = array<i64: 1>, scalar_prefetch = 0 : i64, scratch_operands = 0 : i64, tpu.core_type = #tpu.core_type<tc>, window_params = [{transform_indices = @transform_0, window_bounds = array<i64: 16, 32>}, {pipeline_mode = #tpu.pipeline_mode<synchronous>, transform_indices = @transform_1, window_bounds = array<i64: 32, 64>}, {pipeline_mode = #tpu.pipeline_mode<synchronous>, transform_indices = @transform_2, window_bounds = array<i64: 1, 64>}, {pipeline_mode = #tpu.pipeline_mode<synchronous>, transform_indices = @transform_3, window_bounds = array<i64: 64, 32>}, {pipeline_mode = #tpu.pipeline_mode<synchronous>, transform_indices = @transform_4, window_bounds = array<i64: 1, 32>}, {transform_indices = @transform_5, window_bounds = array<i64: 16, 32>}]} {
    %c0 = arith.constant 0 : index
    %c0_0 = arith.constant 0 : index
    %0 = vector.load %arg1[%c0, %c0_0] : memref<16x32xf32, #tpu.memory_space<vmem>>, vector<16x32xf32>
    %c0_1 = arith.constant 0 : index
    %c0_2 = arith.constant 0 : index
    %1 = vector.load %arg2[%c0_1, %c0_2] : memref<32x64xf32, #tpu.memory_space<vmem>>, vector<32x64xf32>
    %cst = arith.constant dense<0.000000e+00> : vector<16x64xf32>
    %2 = tpu.matmul %0, %1, %cst {dimension_numbers = #tpu.dot_dimension_numbers<[1], [0], [0], [1], [0, 0, 1, 1], [], []>} : vector<16x32xf32>, vector<32x64xf32>, vector<16x64xf32> -> vector<16x64xf32>
    %c0_3 = arith.constant 0 : index
    %c0_4 = arith.constant 0 : index
    %3 = vector.load %arg3[%c0_3, %c0_4] : memref<1x64xf32, #tpu.memory_space<vmem>>, vector<1x64xf32>
    %4 = vector.broadcast %3 : vector<1x64xf32> to vector<16x64xf32>
    %5 = arith.addf %2, %4 : vector<16x64xf32>
    %cst_5 = arith.constant 5.000000e-01 : f32
    %6 = vector.broadcast %cst_5 : f32 to vector<16x64xf32>
    %7 = arith.mulf %6, %5 : vector<16x64xf32>
    %cst_6 = arith.constant 0.707106769 : f32
    %8 = vector.broadcast %cst_6 : f32 to vector<16x64xf32>
    %9 = arith.mulf %5, %8 : vector<16x64xf32>
    %cst_7 = arith.constant 0.000000e+00 : f32
    %10 = vector.broadcast %cst_7 : f32 to vector<16x64xf32>
    %11 = arith.cmpf oge, %9, %10 : vector<16x64xf32>
    %cst_8 = arith.constant 1.000000e+00 : f32
    %cst_9 = arith.constant -1.000000e+00 : f32
    %12 = vector.broadcast %cst_8 : f32 to vector<16x64xf32>
    %13 = vector.broadcast %cst_9 : f32 to vector<16x64xf32>
    %14 = arith.select %11, %12, %13 : vector<16x64xi1>, vector<16x64xf32>
    %15 = math.absf %9 : vector<16x64xf32>
    %cst_10 = arith.constant 0.327591091 : f32
    %16 = vector.broadcast %cst_10 : f32 to vector<16x64xf32>
    %17 = arith.mulf %16, %15 : vector<16x64xf32>
    %cst_11 = arith.constant 1.000000e+00 : f32
    %18 = vector.broadcast %cst_11 : f32 to vector<16x64xf32>
    %19 = arith.addf %18, %17 : vector<16x64xf32>
    %cst_12 = arith.constant 1.000000e+00 : f32
    %20 = vector.broadcast %cst_12 : f32 to vector<16x64xf32>
    %21 = arith.divf %20, %19 : vector<16x64xf32>
    %cst_13 = arith.constant 1.06140542 : f32
    %22 = vector.broadcast %cst_13 : f32 to vector<16x64xf32>
    %23 = arith.mulf %22, %21 : vector<16x64xf32>
    %cst_14 = arith.constant -1.45315206 : f32
    %24 = vector.broadcast %cst_14 : f32 to vector<16x64xf32>
    %25 = arith.addf %23, %24 : vector<16x64xf32>
    %26 = arith.mulf %25, %21 : vector<16x64xf32>
    %cst_15 = arith.constant 1.42141378 : f32
    %27 = vector.broadcast %cst_15 : f32 to vector<16x64xf32>
    %28 = arith.addf %26, %27 : vector<16x64xf32>
    %29 = arith.mulf %28, %21 : vector<16x64xf32>
    %cst_16 = arith.constant -0.284496725 : f32
    %30 = vector.broadcast %cst_16 : f32 to vector<16x64xf32>
    %31 = arith.addf %29, %30 : vector<16x64xf32>
    %32 = arith.mulf %31, %21 : vector<16x64xf32>
    %cst_17 = arith.constant 0.254829586 : f32
    %33 = vector.broadcast %cst_17 : f32 to vector<16x64xf32>
    %34 = arith.addf %32, %33 : vector<16x64xf32>
    %35 = arith.mulf %34, %21 : vector<16x64xf32>
    %cst_18 = arith.constant 0.000000e+00 : f32
    %36 = vector.broadcast %cst_18 : f32 to vector<16x64xf32>
    %37 = arith.subf %36, %15 : vector<16x64xf32>
    %38 = arith.mulf %37, %15 : vector<16x64xf32>
    %39 = math.exp %38 : vector<16x64xf32>
    %40 = arith.mulf %35, %39 : vector<16x64xf32>
    %cst_19 = arith.constant 1.000000e+00 : f32
    %41 = vector.broadcast %cst_19 : f32 to vector<16x64xf32>
    %42 = arith.subf %41, %40 : vector<16x64xf32>
    %43 = arith.mulf %14, %42 : vector<16x64xf32>
    %cst_20 = arith.constant 1.000000e+00 : f32
    %44 = vector.broadcast %cst_20 : f32 to vector<16x64xf32>
    %45 = arith.addf %44, %43 : vector<16x64xf32>
    %46 = arith.mulf %7, %45 : vector<16x64xf32>
    %c0_21 = arith.constant 0 : index
    %c0_22 = arith.constant 0 : index
    %47 = vector.load %arg4[%c0_21, %c0_22] : memref<64x32xf32, #tpu.memory_space<vmem>>, vector<64x32xf32>
    %cst_23 = arith.constant dense<0.000000e+00> : vector<16x32xf32>
    %48 = tpu.matmul %46, %47, %cst_23 {dimension_numbers = #tpu.dot_dimension_numbers<[1], [0], [0], [1], [0, 0, 1, 1], [], []>} : vector<16x64xf32>, vector<64x32xf32>, vector<16x32xf32> -> vector<16x32xf32>
    %c0_24 = arith.constant 0 : index
    %c0_25 = arith.constant 0 : index
    %49 = vector.load %arg5[%c0_24, %c0_25] : memref<1x32xf32, #tpu.memory_space<vmem>>, vector<1x32xf32>
    %50 = vector.broadcast %49 : vector<1x32xf32> to vector<16x32xf32>
    %51 = arith.addf %48, %50 : vector<16x32xf32>
    %c0_26 = arith.constant 0 : index
    %c0_27 = arith.constant 0 : index
    %52 = vector.load %arg6[%c0_26, %c0_27] : memref<16x32xf32, #tpu.memory_space<vmem>>, vector<16x32xf32>
    tpu.vector_store %arg6[%c0_26, %c0_27], %51 {strides = array<i32>} : memref<16x32xf32, #tpu.memory_space<vmem>>, vector<16x32xf32>,
    return
  }
  func.func @transform_0(%arg0: i32) -> (i32, i32) {
    %c0_i32 = arith.constant 0 : i32
    %c0_i32_0 = arith.constant 0 : i32
    return %arg0, %c0_i32 : i32, i32
  }
  func.func @transform_1(%arg0: i32) -> (i32, i32) {
    %c0_i32 = arith.constant 0 : i32
    %c0_i32_0 = arith.constant 0 : i32
    %c0_i32_1 = arith.constant 0 : i32
    return %c0_i32, %c0_i32_0 : i32, i32
  }
  func.func @transform_2(%arg0: i32) -> (i32, i32) {
    %c0_i32 = arith.constant 0 : i32
    %c0_i32_0 = arith.constant 0 : i32
    %c0_i32_1 = arith.constant 0 : i32
    return %c0_i32, %c0_i32_0 : i32, i32
  }
  func.func @transform_3(%arg0: i32) -> (i32, i32) {
    %c0_i32 = arith.constant 0 : i32
    %c0_i32_0 = arith.constant 0 : i32
    %c0_i32_1 = arith.constant 0 : i32
    return %c0_i32, %c0_i32_0 : i32, i32
  }
  func.func @transform_4(%arg0: i32) -> (i32, i32) {
    %c0_i32 = arith.constant 0 : i32
    %c0_i32_0 = arith.constant 0 : i32
    %c0_i32_1 = arith.constant 0 : i32
    return %c0_i32, %c0_i32_0 : i32, i32
  }
  func.func @transform_5(%arg0: i32) -> (i32, i32) {
    %c0_i32 = arith.constant 0 : i32
    %c0_i32_0 = arith.constant 0 : i32
    return %arg0, %c0_i32 : i32, i32
  }
}

</mosaic_0001>

<bundles_post_ra>
// kernel: tpu_custom_call.1
= control target key start
LH: loop header
LB: loop body
LE: loop exit
PB: predicated region body
PF: predicated region fallthrough
CT: control target
= control target key end

     0   :  { %vm34_vm0 = vcmask 261120   ;;  %s495_s0 = inlined_call_operand.vmem [shape: f32[16,32], index: 0, kind: input, shape index: {}]   ;;  %s496_s1 = inlined_call_operand.vmem [shape: f32[32,64], index: 1, kind: input, shape index: {}]   ;;  %s497_s2 = inlined_call_operand.vmem [shape: f32[1,64], index: 2, kind: input, shape index: {}]   ;;  %s498_s3 = inlined_call_operand.vmem [shape: f32[64,32], index: 3, kind: input, shape index: {}]   ;;  %s499_s4 = inlined_call_operand.vmem [shape: f32[1,32], index: 4, kind: input, shape index: {}]   ;;  %s500_s5 = inlined_call_operand.hbm [shape: f32[16,32], index: 5, kind: output, shape index: {}]  }
   0x1   :  { %v23_v0 = vld [vmem:[%s496_s1] sm:$0xff]  ;;  %v24_v1 = vld [vmem:[%s496_s1 + $0x8] sm:$0xff]  ;;  %v25_v2 = vld [vmem:[%s496_s1 + $0x10] sm:$0xff] }
   0x2   :  { %v337_v3 = vpack.c.bf16 %v24_v1, %v23_v0  ;;  %v26_v4 = vld [vmem:[%s496_s1 + $0x18] sm:$0xff]  ;;  %v21_v5 = vld [vmem:[%s495_s0] sm:$0xff] }
   0x3   :  { %v341_v6 = vpack.c.bf16 %v26_v4, %v25_v2  ;;  %315 = vmatprep.mubr.msk.f32.mxu0 %vm34_vm0, %v21_v5 }
   0x4   :  { %10 = vsyncpa [#allocation3], 0  ;;  %338 = vmatprep.subr.bf16.mxu0 %v337_v3  ;;  %v22_v7 = vld [vmem:[%s495_s0 + $0x8] sm:$0xff]  ;;  %v170_v8 = vld [vmem:[%s498_s3] sm:$0xff]  ;;  %v397_v0 = vmov -1.0   ;;  %vm185_vm3 = vcmask 523264  }
   0x5   :  { %340 = vmatpush3.bf16.msra.mxu0 %v337_v3  ;;  %v171_v9 = vld [vmem:[%s498_s3 + $0x8] sm:$0xff]  ;;  %v172_v11 = vld [vmem:[%s498_s3 + $0x10] sm:$0xff]  ;;  %v173_v12 = vld [vmem:[%s498_s3 + $0x18] sm:$0xff]  ;;  %s398_s21 = smov [#allocation2]  }
   0x6   :  { %342 = vmatprep.subr.bf16.mxu0 %v341_v6  ;;  %v345_v10 = vpack.c.bf16 %v171_v9, %v170_v8  ;;  %v349_v13 = vpack.c.bf16 %v173_v12, %v172_v11  ;;  %v174_v14 = vld [vmem:[%s498_s3 + $0x20] sm:$0xff]  ;;  %v175_v15 = vld [vmem:[%s498_s3 + $0x28] sm:$0xff]  ;;  %v176_v17 = vld [vmem:[%s498_s3 + $0x30] sm:$0xff]  ;;  %s274_s22 = sshll.u32 %s398_s21, 4  ;;  %s275_s22 = int_to_ptr.vmem [resolvable:$true] %s274_s22 }
   0x7   :  { %v353_v16 = vpack.c.bf16 %v175_v15, %v174_v14  ;;  %v177_v18 = vld [vmem:[%s498_s3 + $0x38] sm:$0xff]  ;;  %v285_v20 = vld [vmem:[%s497_s2] ss:$0 sm:$0xff]  ;;  %s373_s23 = scalar_lea.vmem %s275_s22, 256  ;;  %p378_p1 = scmp.lt.s32.totalorder %s275_s22, %s275_s22 }
   0x8   :  { %346 = vmatprep.subr.bf16.mxu1 %v345_v10  ;;  %v357_v19 = vpack.c.bf16 %v177_v18, %v176_v17  ;;  %v288_v12 = vld [vmem:[%s499_s4] ss:$0 sm:$0xff]  ;;  %p374_p0 = scmp.ne.s32.totalorder %s275_s22, %s373_s23  ;;  %p379_p2 = scmp.lt.s32.totalorder %s373_s23, %s373_s23 }
   0x9   :  { %344 = vmatpush3.bf16.msra.mxu0 %v341_v6  ;;  %348 = vmatpush3.bf16.msra.mxu1 %v345_v10 }
   0xa   :  { %350 = vmatprep.subr.bf16.mxu1 %v349_v13  ;;  %p380_p3 = por %p379_p2, %p378_p1 }
   0xc   :  { %316 = vmatmul.mubr.msk.f32.vlgmr.msra.gmra.mrb[0].mxu0 %vm34_vm0, %v22_v7  ;;  %p381_p4 = pnand %p380_p3, %p374_p0 }
   0xd   :  { %352 = vmatpush3.bf16.msra.mxu1 %v349_v13 }
   0xe   :  { %354 = vmatprep.subr.bf16.mxu1 %v353_v16 }
  0x11   :  { %356 = vmatpush3.bf16.msra.mxu1 %v353_v16 }
  0x12   :  { %358 = vmatprep.subr.bf16.mxu1 %v357_v19 }
  0x15   :  { %360 = vmatpush3.bf16.msra.mxu1 %v357_v19 }
  0xdf   :  { %v317_v21 = vpop.f32.mrb[0].mxu0 }
  0xe0   :  { %v113_v22 = vadd.f32 %v317_v21, %v285_v20  ;;  %v107_v23 = vpop.f32.mrb[1].mxu0 }
  0xe1   :  { %v108_v24 = vadd.f32 %v285_v20, %v107_v23 }
  0xe2   :  { %v119_v25 = vmul.f32 0.70710677, %v113_v22  ;;  %v117_v9 = vmul.f32 0.5, %v113_v22 }
  0xe3   :  { %v118_v26 = vmul.f32 0.70710677, %v108_v24  ;;  %v116_v7 = vmul.f32 0.5, %v108_v24 }
  0xe4   :  { %v125_v27 = vand.u32 2147483647, %v119_v25  ;;  %vm121_vm1 = vcmp.ge.f32.partialorder %v119_v25, 0.0 }
  0xe5   :  { %v124_v28 = vand.u32 2147483647, %v118_v26  ;;  %vm120_vm2 = vcmp.ge.f32.partialorder %v118_v26, 0.0  ;;  %v123_v1 = vsel %vm121_vm1, 1.0, %v397_v0 }
  0xe6   :  { %v127_v29 = vmul.f32 0.3275911, %v125_v27  ;;  %v153_v33 = vsub.f32 0.0, %v125_v27  ;;  %v122_v4 = vsel %vm120_vm2, 1.0, %v397_v0 }
  0xe7   :  { %v126_v30 = vmul.f32 0.3275911, %v124_v28  ;;  %v152_v34 = vsub.f32 0.0, %v124_v28 }
  0xe8   :  { %v129_v31 = vadd.f32 1.0, %v127_v29  ;;  %v155_v36 = vmul.f32 %v153_v33, %v125_v27 }
  0xe9   :  { %v128_v32 = vadd.f32 1.0, %v126_v30  ;;  %v154_v39 = vmul.f32 %v152_v34, %v124_v28 }
  0xea   :  { %365 = vrcp.f32 %v129_v31  ;;  %v158_v42 = vmul.f32 1.442695, %v155_v36 }
  0xeb   :  { %367 = vrcp.f32 %v128_v32  ;;  %v156_v45 = vmul.f32 1.442695, %v154_v39 }
  0xec   :  { %369 = vpow2.f32 %v158_v42 }
  0xed   :  { %371 = vpow2.f32 %v156_v45 }
  0xf4   :  { %v366_v35 = vpop.eup %365 }
  0xf5   :  { %v368_v37 = vpop.eup %367  ;;  %v135_v38 = vmul.f32 1.0614054, %v366_v35 }
  0xf6   :  { %v134_v40 = vmul.f32 1.0614054, %v368_v37  ;;  %v370_v58 = vpop.eup %369 }
  0xf7   :  { %v137_v41 = vadd.f32 -1.4531521, %v135_v38  ;;  %v372_v60 = vpop.eup %371 }
  0xf8   :  { %v136_v43 = vadd.f32 -1.4531521, %v134_v40 }
  0xf9   :  { %v139_v44 = vmul.f32 %v366_v35, %v137_v41 }
  0xfa   :  { %v138_v46 = vmul.f32 %v368_v37, %v136_v43 }
  0xfb   :  { %v141_v47 = vadd.f32 1.4214138, %v139_v44 }
  0xfc   :  { %v140_v48 = vadd.f32 1.4214138, %v138_v46 }
  0xfd   :  { %v143_v49 = vmul.f32 %v366_v35, %v141_v47 }
  0xfe   :  { %v142_v50 = vmul.f32 %v368_v37, %v140_v48 }
  0xff   :  { %v145_v51 = vadd.f32 -0.28449672, %v143_v49 }
 0x100   :  { %v144_v52 = vadd.f32 -0.28449672, %v142_v50 }
 0x101   :  { %v147_v53 = vmul.f32 %v366_v35, %v145_v51 }
 0x102   :  { %v146_v54 = vmul.f32 %v368_v37, %v144_v52 }
 0x103   :  { %v149_v55 = vadd.f32 0.2548296, %v147_v53 }
 0x104   :  { %v148_v56 = vadd.f32 0.2548296, %v146_v54 }
 0x105   :  { %v151_v57 = vmul.f32 %v366_v35, %v149_v55 }
 0x106   :  { %v150_v59 = vmul.f32 %v368_v37, %v148_v56 }
 0x107   :  { %v161_v61 = vmul.f32 %v370_v58, %v151_v57 }
 0x108   :  { %v160_v62 = vmul.f32 %v372_v60, %v150_v59 }
 0x109   :  { %v163_v63 = vsub.f32 1.0, %v161_v61 }
 0x10a   :  { %v162_v2 = vsub.f32 1.0, %v160_v62 }
 0x10b   :  { %v165_v3 = vmul.f32 %v163_v63, %v123_v1 }
 0x10c   :  { %v164_v5 = vmul.f32 %v162_v2, %v122_v4 }
 0x10d   :  { %v167_v6 = vadd.f32 1.0, %v165_v3 }
 0x10e   :  { %v166_v8 = vadd.f32 1.0, %v164_v5 }
 0x10f   :  { %v169_v11 = vmul.f32 %v167_v6, %v117_v9 }
 0x110   :  { %v168_v10 = vmul.f32 %v166_v8, %v116_v7 }
 0x112   :  { %334 = vmatprep.mubr.msk.f32.mxu1 %vm185_vm3, %v168_v10 }
 0x113   :  { %335 = vmatmul.mubr.msk.f32.vlgmr.msra.gmra.mrb[0].mxu1 %vm185_vm3, %v169_v11 }
 0x1e6   :  { %v336_v13 = vpop.f32.mrb[0].mxu1 }
 0x1e7   :  { %v264_v14 = vadd.f32 %v336_v13, %v288_v12  ;;  %v258_v15 = vpop.f32.mrb[1].mxu1 }
 0x1e8   :  { %v259_v16 = vadd.f32 %v288_v12, %v258_v15 }
 0x1e9   :  { %268 = vst.msk [vmem:[#allocation2 + $0x8] sm:$0xff] %vm34_vm0, %v264_v14 }
 0x1ea   :  { %267 = vst.msk [vmem:[#allocation2] sm:$0xff] %vm34_vm0, %v259_v16 }
 0x1eb   :  { %384 = shalt.err (!%p381_p4)
}
 0x1ec   :  { %s385_s25 = scalar_lea.hbm %s500_s5, 256 }
 0x1ed   :  { %p386_p5 = scmp.ne.s32.totalorder %s500_s5, %s385_s25  ;;  %p389_p6 = scmp.lt.u32.totalorder %s385_s25, %s500_s5 }
 0x1ef   :  { %p391_p7 = pnand %p389_p6, %p386_p5 }
 0x1f1   :  { %394 = shalt.err (!%p391_p7)
}
 0x1f2   :  { %s399_s30 = smov 128   ;;  %s400_s1 = smov 8  }
 0x1f3   :  { %280 = dma.vmem_to_hbm [thread:$0]  %s275_s22, 256, %s500_s5, [#allocation3], %s399_s30, %s399_s30, %s400_s1  }
 0x1f4   :  { %395 = dma.done.wait [#allocation3], 256  }
 0x1f5   :  { %396 = vsyncadd [#allocation3], 4294967040 }
 0x1f6   :  { %284 = vsyncpa [#allocation3], 1 }

</bundles_post_ra>
